<compile_context>
chip_gen: v6e
topology: v6e:2x2x1
jax: 0.10.0
libtpu: 0.0.40
codegen_flags: <defaults>
</compile_context>

<pallas_src>
import math

import numpy as np
import jax
import jax.numpy as jnp
from jax.experimental import pallas as pl
from jax.experimental.pallas import tpu as pltpu


# ----------------------------------------------------------------------------
# Parameter setup (mirrors the PyTorch __init__): pe is (max_length, 1, D).
# ----------------------------------------------------------------------------
def build_fixed_positional_encoding(embedding_dim: int, max_length: int = 5000,
                                    dtype=jnp.float32) -> jnp.ndarray:
    pe = np.zeros((max_length, embedding_dim), dtype=np.float32)
    position = np.arange(0, max_length, dtype=np.float32)[:, None]            # (L, 1)
    div_term = np.exp(
        np.arange(0, embedding_dim, 2, dtype=np.float32)
        * (-np.log(10000.0) / embedding_dim)
    )                                                                          # (D/2,)
    pe[:, 0::2] = np.sin(position * div_term)
    pe[:, 1::2] = np.cos(position * div_term)
    return jnp.asarray(pe[:, None, :], dtype=dtype)                            # (L, 1, D)


# ----------------------------------------------------------------------------
# Kernels
# ----------------------------------------------------------------------------
def _bcast_add_kernel(x_ref, pe_ref, o_ref):
    # (ts, B, td) + (ts, 1, td): pe broadcasts over the batch (sublane) dim.
    o_ref[...] = x_ref[...] + pe_ref[...].astype(o_ref.dtype)


def _make_packed_kernel(k: int, batch: int, dim: int):
    """Kernel for the lane-dense flattened path.

    x/o blocks: (ts, k*batch*dim) -- k seq rows packed per 128-lane-multiple row.
    pe block:   (ts, k*dim)       -- un-replicated; each dim-wide chunk is reused
                                     for all `batch` copies via static lane slices,
                                     so pe HBM traffic is 1/batch of x.
    """
    row_w = batch * dim

    def kernel(x_ref, pe_ref, o_ref):
        pe_t = pe_ref[...].astype(o_ref.dtype)                 # (ts, k*dim)
        for j in range(k):                                      # static unroll
            pe_j = pe_t[:, j * dim:(j + 1) * dim]               # (ts, dim)
            for b in range(batch):
                c0 = j * row_w + b * dim
                o_ref[:, c0:c0 + dim] = x_ref[:, c0:c0 + dim] + pe_j

    return kernel


# ----------------------------------------------------------------------------
# Tiling helpers
# ----------------------------------------------------------------------------
def _sublane_align(dtype) -> int:
    # f32 -> 8 rows, bf16/f16 -> 16, int8/fp8 -> 32 (sub-32-bit packs sublanes).
    return {4: 8, 2: 16, 1: 32}.get(jnp.dtype(dtype).itemsize, 8)


def _device_tiling():
    """(target x-tile bytes, vmem_limit_bytes or None) per TPU generation."""
    kind = ""
    try:
        kind = jax.devices()[0].device_kind.lower()
    except Exception:
        pass
    if "v6" in kind:
        return 4 << 20, None            # ~17-24 MiB working set < 32 MiB default scope
    if "v7" in kind or "tpu7" in kind:
        return 6 << 20, 48 << 20        # raise scoped VMEM; 48 MiB < 64 MiB physical
    return 2 << 20, None                # v5e & fallback: ~9 MiB < 16 MiB default scope


def _choose_rows(n_rows: int, row_bytes: int, target_bytes: int, align: int,
                 min_blocks: int = 1) -> int:
    """Rows per tile: ~target_bytes, multiple of `align` (or the full extent),
    and at least `min_blocks` grid steps when requested (megacore sharding)."""
    ts = max(1, target_bytes // max(row_bytes, 1))
    if min_blocks > 1:
        ts = min(ts, -(-n_rows // min_blocks))
    if ts >= n_rows:
        return n_rows
    ts = max(align, (ts // align) * align)
    return n_rows if ts >= n_rows else ts


# ----------------------------------------------------------------------------
# Forward pass
# ----------------------------------------------------------------------------
def fixed_positional_encoding(x: jnp.ndarray, pe: jnp.ndarray,
                              *, seq_tile: int | None = None) -> jnp.ndarray:
    """x: (S, B, D); pe: (max_length, 1, D).  Returns x + pe[:S] (broadcast on B)."""
    S, B, D = x.shape
    L, one, Dp = pe.shape
    assert one == 1 and Dp == D, "pe table shape must be (max_length, 1, D)"
    assert S <= L, "sequence length exceeds positional-encoding max_length"

    itemsize = jnp.dtype(x.dtype).itemsize
    align = max(_sublane_align(x.dtype), _sublane_align(pe.dtype))
    target, vmem_limit = _device_tiling()

    # ---- Path A: lane-dense flattened/packed path (small trailing dims) ----
    use_packed = (D < 128) or (B < 8 and D % 128 == 0)
    k = 1
    if use_packed:
        W = B * D
        k = 1 if W % 128 == 0 else 128 // math.gcd(W, 128)
        if k > 16 or k * B > 128:       # unroll / padding would outgrow the benefit
            use_packed = False

    if use_packed:
        W = B * D
        S_pad = -(-S // k) * k
        n_rows, row_w = S_pad // k, k * W

        x_in = x if S_pad == S else jnp.pad(x, ((0, S_pad - S), (0, 0), (0, 0)))
        x_in = x_in.reshape(n_rows, row_w)

        # pe glue is S-bounded and 1/B the size of x -- never max_length-sized,
        # never batch-replicated.
        pe_rows = pe[:S, 0, :]                                   # (S, D)
        if S_pad != S:
            pe_rows = jnp.pad(pe_rows, ((0, S_pad - S), (0, 0)))
        pe_in = pe_rows.reshape(n_rows, k * D)

        row_bytes = row_w * itemsize
        min_blocks = 2 if n_rows * row_bytes > (1 << 20) else 1  # megacore split
        if seq_tile is not None:
            ts = n_rows if seq_tile >= n_rows else max(align, (seq_tile // align) * align)
        else:
            ts = _choose_rows(n_rows, row_bytes, target, align, min_blocks)
        ts = min(ts, n_rows)

        out = pl.pallas_call(
            _make_packed_kernel(k, B, D),
            out_shape=jax.ShapeDtypeStruct((n_rows, row_w), x.dtype),
            grid_spec=pl.GridSpec(
                grid=(pl.cdiv(n_rows, ts),),
                in_specs=[
                    pl.BlockSpec((ts, row_w), lambda s: (s, 0)),
                    pl.BlockSpec((ts, k * D), lambda s: (s, 0)),
                ],
                out_specs=pl.BlockSpec((ts, row_w), lambda s: (s, 0)),
            ),
            compiler_params=pltpu.CompilerParams(
                dimension_semantics=("parallel",),
                vmem_limit_bytes=vmem_limit),
            input_output_aliases={0: 0},
        )(x_in, pe_in)
        out = out.reshape(S_pad, B, D)
        return out if S_pad == S else out[:S]

    # ---- Path B: general 3-D streaming path (D >= 128: lane-dense already) ----
    row_bytes = B * D * itemsize
    if seq_tile is None and D > 128 and row_bytes * align > 2 * target:
        # Huge rows: tile the embedding dim too so tiles stay ~target bytes.
        ts = align
        td = max(128, ((target // max(align * B * itemsize, 1)) // 128) * 128)
        td = td if td < D else D
    else:
        td = D
        min_blocks = 2 if S * row_bytes > (1 << 20) else 1       # megacore split
        if seq_tile is not None:
            ts = S if seq_tile >= S else max(align, (seq_tile // align) * align)
        else:
            ts = _choose_rows(S, row_bytes, target, align, min_blocks)
    ts = min(ts, S)

    s_blocks, d_blocks = pl.cdiv(S, ts), pl.cdiv(D, td)
    cover = s_blocks * ts
    # The partial last block prefetches pe rows in [S, cover); make sure they
    # exist even if the table is sized tightly to S (S-bounded pad otherwise).
    pe_in = pe if cover <= L else jnp.pad(pe[:S], ((0, cover - S), (0, 0), (0, 0)))

    return pl.pallas_call(
        _bcast_add_kernel,
        out_shape=jax.ShapeDtypeStruct((S, B, D), x.dtype),
        grid_spec=pl.GridSpec(
            grid=(s_blocks, d_blocks),
            in_specs=[
                pl.BlockSpec((ts, B, td), lambda s, d: (s, 0, d)),
                pl.BlockSpec((ts, 1, td), lambda s, d: (s, 0, d)),
            ],
            out_specs=pl.BlockSpec((ts, B, td), lambda s, d: (s, 0, d)),
        ),
        compiler_params=pltpu.CompilerParams(
            dimension_semantics=("parallel", "parallel"),
            vmem_limit_bytes=vmem_limit),
        input_output_aliases={0: 0},
    )(x, pe_in)


# ----------------------------------------------------------------------------
# Self-test
# ----------------------------------------------------------------------------
if __name__ == "__main__":
    MAX_LEN = 64
    key = jax.random.PRNGKey(0)
    k1, k2, k3 = jax.random.split(key, 3)

    # Case 1: small trailing dims (B=2, D=32) -> packed lane-dense path
    # (k=2 seq rows per 128-lane output row), multi-step grid + partial block.
    S1, B1, D1 = 20, 2, 32
    x1 = jax.random.normal(k1, (S1, B1, D1), dtype=jnp.float32)
    pe1 = build_fixed_positional_encoding(D1, MAX_LEN)
    ref1 = x1 + pe1[:S1]                       # reference computed before the call
    out1 = jax.block_until_ready(fixed_positional_encoding(x1, pe1, seq_tile=8))
    np.testing.assert_allclose(np.asarray(out1), np.asarray(ref1), rtol=1e-6, atol=1e-6)

    # Case 2: (B, D) fills the (8, 128) vreg -> general 3-D streaming path.
    S2, B2, D2 = 8, 8, 128
    x2 = jax.random.normal(k2, (S2, B2, D2), dtype=jnp.float32)
    pe2 = build_fixed_positional_encoding(D2, MAX_LEN)
    ref2 = x2 + pe2[:S2]
    out2 = jax.block_until_ready(fixed_positional_encoding(x2, pe2))
    np.testing.assert_allclose(np.asarray(out2), np.asarray(ref2), rtol=1e-6, atol=1e-6)

    # Case 3: bf16, multi-block general path (dtype-aware 16-row sublane tiles,
    # partial last block reading pe rows past S but inside max_length).
    S3, B3, D3 = 40, 8, 128
    x3 = jax.random.normal(k3, (S3, B3, D3), dtype=jnp.bfloat16)
    pe3 = build_fixed_positional_encoding(D3, MAX_LEN, dtype=jnp.bfloat16)
    ref3 = x3 + pe3[:S3]
    out3 = jax.block_until_ready(fixed_positional_encoding(x3, pe3, seq_tile=16))
    np.testing.assert_allclose(np.asarray(out3).astype(np.float32),
                               np.asarray(ref3).astype(np.float32),
                               rtol=2e-2, atol=2e-2)

    print("KERNEL_OK")
</pallas_src>

<mosaic_0001>
module attributes {stable_mosaic.version = 11 : i64} {
  func.func @kernel(%arg0: i32, %arg1: memref<8x128xf32, #tpu.memory_space<vmem>>, %arg2: memref<8x64xf32, #tpu.memory_space<vmem>>, %arg3: memref<8x128xf32, #tpu.memory_space<vmem>>) attributes {dimension_semantics = [#tpu.dimension_semantics<parallel>], iteration_bounds = array<i64: 2>, scalar_prefetch = 0 : i64, scratch_operands = 0 : i64, tpu.core_type = #tpu.core_type<tc>, window_params = [{transform_indices = @transform_0, window_bounds = array<i64: 8, 128>}, {transform_indices = @transform_1, window_bounds = array<i64: 8, 64>}, {transform_indices = @transform_2, window_bounds = array<i64: 8, 128>}]} {
    %c0 = arith.constant 0 : index
    %c0_0 = arith.constant 0 : index
    %0 = vector.load %arg2[%c0, %c0_0] : memref<8x64xf32, #tpu.memory_space<vmem>>, vector<8x64xf32>
    %1 = vector.extract_strided_slice %0 {offsets = [0, 0], sizes = [8, 32], strides = [1, 1]} : vector<8x64xf32> to vector<8x32xf32>
    %c0_1 = arith.constant 0 : index
    %c0_2 = arith.constant 0 : index
    %2 = vector.load %arg1[%c0_1, %c0_2] : memref<8x128xf32, #tpu.memory_space<vmem>>, vector<8x32xf32>
    %3 = arith.addf %2, %1 : vector<8x32xf32>
    %c0_3 = arith.constant 0 : index
    %c0_4 = arith.constant 0 : index
    %4 = vector.load %arg3[%c0_3, %c0_4] : memref<8x128xf32, #tpu.memory_space<vmem>>, vector<8x32xf32>
    tpu.vector_store %arg3[%c0_3, %c0_4], %3 {strides = array<i32>} : memref<8x128xf32, #tpu.memory_space<vmem>>, vector<8x32xf32>,
    %c0_5 = arith.constant 0 : index
    %c32 = arith.constant 32 : index
    %5 = vector.load %arg1[%c0_5, %c32] : memref<8x128xf32, #tpu.memory_space<vmem>>, vector<8x32xf32>
    %6 = arith.addf %5, %1 : vector<8x32xf32>
    %c0_6 = arith.constant 0 : index
    %c32_7 = arith.constant 32 : index
    %7 = vector.load %arg3[%c0_6, %c32_7] : memref<8x128xf32, #tpu.memory_space<vmem>>, vector<8x32xf32>
    tpu.vector_store %arg3[%c0_6, %c32_7], %6 {strides = array<i32>} : memref<8x128xf32, #tpu.memory_space<vmem>>, vector<8x32xf32>,
    %8 = vector.extract_strided_slice %0 {offsets = [0, 32], sizes = [8, 32], strides = [1, 1]} : vector<8x64xf32> to vector<8x32xf32>
    %c0_8 = arith.constant 0 : index
    %c64 = arith.constant 64 : index
    %9 = vector.load %arg1[%c0_8, %c64] : memref<8x128xf32, #tpu.memory_space<vmem>>, vector<8x32xf32>
    %10 = arith.addf %9, %8 : vector<8x32xf32>
    %c0_9 = arith.constant 0 : index
    %c64_10 = arith.constant 64 : index
    %11 = vector.load %arg3[%c0_9, %c64_10] : memref<8x128xf32, #tpu.memory_space<vmem>>, vector<8x32xf32>
    tpu.vector_store %arg3[%c0_9, %c64_10], %10 {strides = array<i32>} : memref<8x128xf32, #tpu.memory_space<vmem>>, vector<8x32xf32>,
    %c0_11 = arith.constant 0 : index
    %c96 = arith.constant 96 : index
    %12 = vector.load %arg1[%c0_11, %c96] : memref<8x128xf32, #tpu.memory_space<vmem>>, vector<8x32xf32>
    %13 = arith.addf %12, %8 : vector<8x32xf32>
    %c0_12 = arith.constant 0 : index
    %c96_13 = arith.constant 96 : index
    %14 = vector.load %arg3[%c0_12, %c96_13] : memref<8x128xf32, #tpu.memory_space<vmem>>, vector<8x32xf32>
    tpu.vector_store %arg3[%c0_12, %c96_13], %13 {strides = array<i32>} : memref<8x128xf32, #tpu.memory_space<vmem>>, vector<8x32xf32>,
    return
  }
  func.func @transform_0(%arg0: i32) -> (i32, i32) {
    %c0_i32 = arith.constant 0 : i32
    %c0_i32_0 = arith.constant 0 : i32
    return %arg0, %c0_i32 : i32, i32
  }
  func.func @transform_1(%arg0: i32) -> (i32, i32) {
    %c0_i32 = arith.constant 0 : i32
    %c0_i32_0 = arith.constant 0 : i32
    return %arg0, %c0_i32 : i32, i32
  }
  func.func @transform_2(%arg0: i32) -> (i32, i32) {
    %c0_i32 = arith.constant 0 : i32
    %c0_i32_0 = arith.constant 0 : i32
    return %arg0, %c0_i32 : i32, i32
  }
}

</mosaic_0001>

<bundles_post_ra>
// kernel: tpu_custom_call.1
= control target key start
LH: loop header
LB: loop body
LE: loop exit
PB: predicated region body
PF: predicated region fallthrough
CT: control target
= control target key end

     0   :  { %7 = vsyncpa [#allocation3], 0  ;;  %s616_s0 = inlined_call_operand.hbm [shape: f32[10,128], index: 0, kind: input, shape index: {}, may-alias: {0,2}]   ;;  %s617_s1 = inlined_call_operand.vmem [shape: f32[10,64], index: 1, kind: input, shape index: {}]   ;;  %s618_s2 = inlined_call_operand.hbm [shape: f32[10,128], index: 2, kind: output, shape index: {}, may-alias: {0,2}]  }
   0x1   :  { %9 = vsyncpa [#allocation3 + $0x1], 0 }
   0x2   :  { %10 = vsyncpa [#allocation4], 0 }
   0x3   :  { %12 = vsyncpa [#allocation4 + $0x1], 0  ;;  %s470_s9 = smov 0   ;;  %s472_s10 = smov 0  }
   0x4   :  { %s474_s11 = smov 0   ;;  %s476_s12 = smov 0  }
   0x5 LB: > { %s491_s13 = sadd.s32 4294967295, %s449_s12   ;;  %s296_s14 = sadd.s32 4294967294, %s449_s12   ;;  %s449_s12 = sphi %s476_s12, %s635_s12   ;;  %s445_s11 = sphi %s474_s11, %s634_s11   ;;  %s441_s10 = sphi %s472_s10, %s633_s10   ;;  %s437_s9 = sphi %s470_s9, %s632_s9  }
   0x6   : > { %s495_s15 = sadd.s32 1, %s449_s12   ;;  %s25_s16 = sadd.s32 1, %s445_s11 }
   0x7   : > { %s22_s17 = ssub.s32 %s449_s12, %s495_s15  ;;  %p32_p0 = scmp.ne.s32.totalorder %s445_s11, %s441_s10 }
   0x8   : > { %p23_p1 = scmp.eq.s32.totalorder %s22_s17, 0  ;;  %p33_p2 = scmp.eq.s32.totalorder %s449_s12, 0 }
   0x9   : > { %p38_p3 = scmp.ne.s32.totalorder %s441_s10, %s437_s9  ;;  %p39_p4 = scmp.eq.s32.totalorder %s491_s13, 0 }
   0xa   : > { %s507_s18 = scalar_select %p23_p1, %s445_s11, %s25_s16  }
   0xb   : > { %p509_p5 = por %p33_p2, %p32_p0  ;;  %p513_p6 = por %p39_p4, %p38_p3 }
   0xc   : > { %p88_p7 = scmp.eq.s32.totalorder %s491_s13, 1  ;;  %p94_p8 = scmp.eq.s32.totalorder %s296_s14, 1 }
   0xd   : > { %s622_s20 = scalar_select %p513_p6, 1, 0 }
   0xe   : > { %p321_p10 = scmp.lt.s32.totalorder %s449_s12, 2  ;;  %p520_p11 = por %p88_p7, %p32_p0 }
   0xf   : > { %p524_p12 = por %p94_p8, %p38_p3  ;;  %s114_s23 = sand.u32 1, %s445_s11  }
  0x10   : > { %s623_s21 = scalar_select %p520_p11, 1, 0 }
  0x11   : > { %s624_s22 = scalar_select %p524_p12, 1, 0 }
  0x12   : > { %s300_s24 = sshll.u32 %s449_s12, 7  ;;  %s299_s25 = sshll.u32 %s114_s23, 3 }
  0x13   : > { %s533_s28 = scalar_lea.hbm %s616_s0, %s300_s24  ;;  %s118_s29 = scalar_lea.vmem [#allocation2], %s299_s25 }
  0x14   : > { %s125_s30 = sshll.u32 %s118_s29, 4  ;;  %p537_p13 = pnand %p321_p10, %p509_p5  ;;  %s541_s30 = int_to_ptr.vmem [resolvable:$true] %s125_s30 }
  0x15   : > { %s115_s4 = scalar_lea.sflag [#allocation3], %s114_s23  ;;  %s357_s5 = scalar_lea.hbm %s533_s28, 128 }
  0x16   : > { %p358_p2 = scmp.ne.s32.totalorder %s533_s28, %s357_s5  ;;  %p359_p3 = pneg %p537_p13 }
  0x17   : > { %s362_s8 = scalar_lea.hbm %s616_s0, 256  ;;  %p363_p5 = scmp.lt.s32.totalorder %s533_s28, %s616_s0 }
  0x18   : > { %p360_p4 = pnand %p359_p3, %p358_p2  ;;  %p364_p8 = scmp.lt.s32.totalorder %s362_s8, %s357_s5 }
  0x1a   : > { %p361_p7 = pneg %p360_p4  ;;  %p365_p10 = por %p364_p8, %p363_p5 }
  0x1c   : > { %p366_p9 = pnand %p365_p10, %p361_p7 }
  0x1e   : > { %369 = shalt.err (!%p366_p9)
}
  0x1f   : > { %s370_s17 = scalar_lea.vmem %s541_s30, 128  ;;  %s451_s19 = smov [#allocation2]  }
  0x20   : > { %p371_p0 = scmp.ne.s32.totalorder %s541_s30, %s370_s17  ;;  %s375_s23 = sshll.u32 %s451_s19, 4  ;;  %s376_s23 = int_to_ptr.vmem [resolvable:$false] %s375_s23 }
  0x21   : > { %s377_s24 = scalar_lea.vmem %s376_s23, 256  ;;  %p378_p4 = scmp.lt.s32.totalorder %s541_s30, %s376_s23 }
  0x22   : > { %p373_p1 = pnand %p371_p0, %p359_p3  ;;  %p379_p12 = scmp.lt.s32.totalorder %s377_s24, %s370_s17 }
  0x24   : > { %p374_p2 = pneg %p373_p1  ;;  %p380_p11 = por %p379_p12, %p378_p4 }
  0x26   : > { %p381_p6 = pnand %p380_p11, %p374_p2 }
  0x28   : > { %384 = shalt.err (!%p381_p6)
}
  0x29   : > { %316 = dma.hbm_to_vmem [thread:$0]  (!%p537_p13), %s533_s28, 128, %s541_s30, %s115_s4  }
  0x2a   : > { %p626_p9 = scmp.lt.s32.totalorder %s449_s12, 3  ;;  %p627_p7 = scmp.ge.s32.totalorder %s449_s12, 1 }
  0x2c   : > { %p138_p0 = pnand %p627_p7, %p626_p9 }
  0x2d   : > { %s568_s25 = sand.u32 (!%p138_p0), 1, %s441_s10   ;;  %p628_p6 = scmp.ne.s32.totalorder (!%p138_p0), %s622_s20, 0 }
  0x2e   : > { %141 = sbr.rel (%p138_p0) target bundleno = 193 (0xc1), region = 28  ;;  %s302_s26 = sshll.u32 (!%p138_p0), %s568_s25, 3 }
  0x2f   : > { %s144_s27 = scalar_lea.sflag (!%p138_p0), [#allocation3], %s568_s25  ;;  %s147_s29 = scalar_lea.vmem (!%p138_p0), [#allocation2], %s302_s26 }
  0x33   : > { %428 = dma.done.wait (%p628_p6), %s144_s27, 128  }
  0x34   : > { %430 = vsyncadd (%p628_p6), %s144_s27, 4294967168  ;;  %p172_p11 = scmp.lt.s32.totalorder %s491_s13, 1  ;;  %v177_v1 = vld [vmem:[%s147_s29] sm:$0xff]  ;;  %vm179_vm0 = vcmask 261120   ;;  %s452_s6 = smov 32   ;;  %vm187_vm1 = vcmask 523520  }
  0x35   : > { %s171_s7 = scalar_lea.vmem [#allocation5], %s302_s26  ;;  %s453_s20 = smov 64   ;;  %vm191_vm2 = vcmask 785920   ;;  %vm198_vm3 = vcmask 1048320  }
  0x36   : > { %s173_s28 = scalar_select %p172_p11, %s491_s13, 1 }
  0x37   : > { %s306_s8 = sshll.u32 %s491_s13, 7  ;;  %s214_s14 = sshll.u32 %s171_s7, 4  ;;  %s215_s14 = int_to_ptr.vmem [resolvable:$true] %s214_s14 }
  0x38   : > { %s304_s30 = sshll.u32 %s173_s28, 3  ;;  %s212_s19 = scalar_lea.hbm %s618_s2, %s306_s8 }
  0x39   : > { %s175_s5 = scalar_lea.vmem %s617_s1, %s304_s30  ;;  %s201_s23 = scalar_lea.sflag [#allocation4], %s568_s25 }
  0x3a   : > { %v176_v0 = vld [vmem:[%s175_s5] sm:$0xff]  ;;  %s385_s24 = scalar_lea.vmem %s215_s14, 128  ;;  %p629_p13 = scmp.ne.s32.totalorder %s623_s21, 0 }
  0x3b   : > { %183 = vrot.lane.b32.xlu0 %v176_v0, %s452_s6  ;;  %v178_v2 = vadd.f32 %v177_v1, %v176_v0  ;;  %p386_p12 = scmp.ne.s32.totalorder %s215_s14, %s385_s24  ;;  %s454_s26 = smov [#allocation5]  }
  0x3c   : > { %s389_s13 = sshll.u32 %s454_s26, 4  ;;  %s390_s13 = int_to_ptr.vmem [resolvable:$false] %s389_s13 }
  0x3d   : > { %180 = vst.msk [vmem:[%s171_s7] sm:$0xff] %vm179_vm0, %v178_v2  ;;  %p387_p1 = pnand %p386_p12, %p629_p13  ;;  %s391_s27 = scalar_lea.vmem %s390_s13, 256 }
  0x3e   : > { %p392_p5 = scmp.lt.s32.totalorder %s215_s14, %s390_s13  ;;  %p393_p8 = scmp.lt.s32.totalorder %s391_s27, %s385_s24 }
  0x3f   : > { %194 = vrot.lane.b32.xlu0 %v176_v0, %s453_s20  ;;  %p388_p3 = pneg %p387_p1 }
  0x40   : > { %p394_p10 = por %p393_p8, %p392_p5 }
  0x42   : > { %p395_p2 = pnand %p394_p10, %p388_p3 }
  0xad   : > { %v184_v3 = vpop.permute.xlu0 %183 }
  0xae   : > { %v186_v4 = vadd.f32 %v184_v3, %v177_v1 }
  0xb0   : > { %188 = vst.msk [vmem:[%s171_s7] sm:$0xff] %vm187_vm1, %v186_v4 }
  0xb1   : > { %v195_v5 = vpop.permute.xlu0 %194  ;;  %192 = vst.msk [vmem:[%s171_s7] sm:$0xff] %vm191_vm2, %v186_v4 }
  0xb2   : > { %v197_v6 = vadd.f32 %v195_v5, %v177_v1 }
  0xb4   : > { %199 = vst.msk [vmem:[%s171_s7] sm:$0xff] %vm198_vm3, %v197_v6 }
  0xb5   : > { %398 = shalt.err (!%p395_p2)
}
  0xb6   : > { %s399_s29 = scalar_lea.hbm %s212_s19, 128  ;;  %s403_s30 = scalar_lea.hbm %s618_s2, 256 }
  0xb7   : > { %p400_p4 = scmp.ne.s32.totalorder %s212_s19, %s399_s29  ;;  %p404_p0 = scmp.lt.s32.totalorder %s212_s19, %s618_s2 }
  0xb8   : > { %p405_p6 = scmp.lt.s32.totalorder %s403_s30, %s399_s29 }
  0xb9   : > { %p401_p9 = pnand %p400_p4, %p629_p13 }
  0xba   : > { %p406_p11 = por %p405_p6, %p404_p0 }
  0xbb   : > { %p402_p7 = pneg %p401_p9 }
  0xbd   : > { %p407_p12 = pnand %p406_p11, %p402_p7 }
  0xbf   : > { %410 = shalt.err (!%p407_p12)
}
  0xc0   : > { %311 = dma.vmem_to_hbm [thread:$0]  (%p629_p13), %s215_s14, 128, %s212_s19, %s201_s23  }
  0xc1 PF: > { %s226_s5 = sand.u32 1, %s437_s9   ;;  %p630_p1 = scmp.ne.s32.totalorder %s624_s22, 0 }
  0xc2   : > { %p631_p3 = scmp.ge.s32.totalorder %s449_s12, 2  ;;  %s227_s6 = scalar_lea.sflag [#allocation4], %s226_s5 }
  0xc4   : > { %p318_p5 = pnand %p631_p3, %p630_p1 }
  0xc6   : > { %p319_p8 = pneg %p318_p5 }
  0xc8   : > { %432 = dma.done.wait (%p319_p8), %s227_s6, 128  }
  0xc9   : > { %434 = vsyncadd (%p319_p8), %s227_s6, 4294967168  ;;  %p15_p10 = scmp.ge.s32.totalorder %s495_s15, 4   ;;  %s632_s9 = smov %s441_s10 }
  0xca   : > { %s633_s10 = smov %s445_s11  ;;  %s634_s11 = smov %s507_s18 }
  0xcb   : > { %s635_s12 = smov %s495_s15  ;;  %17 = sbr.rel (!%p15_p10) target bundleno = 5 (0x5), region = 76 }
  0xd0   :  { %232 = vsyncpa [#allocation3], 1 }
  0xd1   :  { %234 = vsyncpa [#allocation3 + $0x1], 1 }
  0xd2   :  { %235 = vsyncpa [#allocation4], 1 }
  0xd3   :  { %237 = vsyncpa [#allocation4 + $0x1], 1 }

</bundles_post_ra>
